<compile_context>
chip_gen: v7x
topology: tpu7x:2x2x1
jax: 0.10.0
libtpu: 0.0.40
codegen_flags: <defaults>
</compile_context>

<pallas_src>
import jax
import jax.numpy as jnp
from jax import lax
from jax.experimental import pallas as pl
from jax.experimental.pallas import tpu as pltpu


def _round_up(v, m):
    return (v + m - 1) // m * m


def _tune_kernel(x_ref, w_ref, g_ref, b_ref, o_ref):
    """One (batch, time-tile) block per grid step.

    x_ref : (1, C, Tt)  input tile, NCT layout (channels on sublanes, time on lanes)
    w_ref : (C, C)      W^T, where W = softmax(spatial_weights * temp, dim=0)
    g_ref : (C, 1)      LayerNorm gamma
    b_ref : (C, 1)      LayerNorm beta
    o_ref : (1, C, Tt)  output tile
    """
    x = x_ref[0].astype(jnp.float32)                       # (C, Tt)

    # Spatial mixing: y[co, t] = sum_ci W[ci, co] * x[ci, t]  ==  (W^T @ x)
    y = jnp.dot(w_ref[...], x, preferred_element_type=jnp.float32)  # (C, Tt)

    # LayerNorm over the channel (sublane) axis, eps = 1e-5, biased variance.
    c = y.shape[0]
    mean = jnp.sum(y, axis=0, keepdims=True) * (1.0 / c)   # (1, Tt)
    cen = y - mean
    var = jnp.sum(cen * cen, axis=0, keepdims=True) * (1.0 / c)
    inv = lax.rsqrt(var + 1e-5)                            # EUP slot

    out = cen * inv * g_ref[...] + b_ref[...]              # lane/sublane broadcasts
    o_ref[0] = out.astype(o_ref.dtype)


def tune_module(x, spatial_weights, temp, gamma, beta, *, t_tile=8192):
    """x: [B, C, T] (PyTorch layout).  spatial_weights: (C, C).  gamma/beta: (C,)."""
    B, C, T = x.shape

    # softmax over dim 0 (as in torch.softmax(..., dim=0)), then transpose so the
    # kernel can do (C_out, C_in) @ (C_in, Tt) directly.
    w = jax.nn.softmax(spatial_weights.astype(jnp.float32) * temp, axis=0)
    w_t = jnp.transpose(w)                                  # (C_out, C_in)

    g2 = gamma.reshape(C, 1).astype(jnp.float32)
    b2 = beta.reshape(C, 1).astype(jnp.float32)

    # Time tiling: lane-dense tiles (multiple of 128), as large as t_tile.
    Tt = min(t_tile, _round_up(T, 128))
    Tp = _round_up(T, Tt)
    x_in = jnp.pad(x, ((0, 0), (0, 0), (0, Tp - T))) if Tp != T else x

    out = pl.pallas_call(
        _tune_kernel,
        out_shape=jax.ShapeDtypeStruct((B, C, Tp), x.dtype),
        grid_spec=pltpu.PrefetchScalarGridSpec(
            num_scalar_prefetch=0,
            grid=(B, Tp // Tt),
            in_specs=[
                pl.BlockSpec((1, C, Tt), lambda b, t: (b, 0, t)),
                pl.BlockSpec((C, C), lambda b, t: (0, 0)),
                pl.BlockSpec((C, 1), lambda b, t: (0, 0)),
                pl.BlockSpec((C, 1), lambda b, t: (0, 0)),
            ],
            out_specs=pl.BlockSpec((1, C, Tt), lambda b, t: (b, 0, t)),
        ),
        compiler_params=pltpu.CompilerParams(
            dimension_semantics=("parallel", "parallel")),
    )(x_in, w_t, g2, b2)

    if Tp != T:
        out = out[:, :, :T]
    return out


def _reference(x, spatial_weights, temp, gamma, beta, eps=1e-5):
    """Pure-JAX replica of TuneModule.forward."""
    xt = jnp.transpose(x, (0, 2, 1))                        # [B, T, C]
    w = jax.nn.softmax(spatial_weights * temp, axis=0)
    y = jnp.einsum("btc,cd->btd", xt, w)
    mean = jnp.mean(y, axis=-1, keepdims=True)
    var = jnp.mean((y - mean) ** 2, axis=-1, keepdims=True)
    yn = (y - mean) / jnp.sqrt(var + eps) * gamma + beta
    return jnp.transpose(yn, (0, 2, 1))


if __name__ == "__main__":
    # Shapes consistent with the module: [batch, n_electrodes, time], default C = 8.
    B, C, T = 2, 8, 256
    temp = jnp.float32(5.0)

    key = jax.random.PRNGKey(0)
    k_x, k_w, k_g, k_b = jax.random.split(key, 4)

    x = jax.random.normal(k_x, (B, C, T), dtype=jnp.float32)
    # Module init is eye(C); perturb so the test exercises the full mixing path.
    spatial_weights = (jnp.eye(C, dtype=jnp.float32)
                       + 0.3 * jax.random.normal(k_w, (C, C), dtype=jnp.float32))
    gamma = 1.0 + 0.1 * jax.random.normal(k_g, (C,), dtype=jnp.float32)
    beta = 0.1 * jax.random.normal(k_b, (C,), dtype=jnp.float32)

    out = jax.jit(tune_module)(x, spatial_weights, temp, gamma, beta)
    out = jax.block_until_ready(out)

    ref = _reference(x, spatial_weights, temp, gamma, beta)
    assert out.shape == (B, C, T)
    assert jnp.allclose(out, ref, atol=1e-4, rtol=1e-4), "mismatch vs reference"

    print("KERNEL_OK")
</pallas_src>

<mosaic_0001>
module attributes {stable_mosaic.version = 11 : i64} {
  func.func @_tune_kernel(%arg0: i32, %arg1: i32, %arg2: memref<1x8x256xf32, #tpu.memory_space<vmem>>, %arg3: memref<8x8xf32, #tpu.memory_space<vmem>>, %arg4: memref<8x1xf32, #tpu.memory_space<vmem>>, %arg5: memref<8x1xf32, #tpu.memory_space<vmem>>, %arg6: memref<1x8x256xf32, #tpu.memory_space<vmem>>) attributes {dimension_semantics = [#tpu.dimension_semantics<parallel>, #tpu.dimension_semantics<parallel>], iteration_bounds = array<i64: 2, 1>, scalar_prefetch = 0 : i64, scratch_operands = 0 : i64, tpu.core_type = #tpu.core_type<tc>, window_params = [{transform_indices = @transform_0, window_bounds = array<i64: 1, 8, 256>}, {pipeline_mode = #tpu.pipeline_mode<synchronous>, transform_indices = @transform_1, window_bounds = array<i64: 8, 8>}, {pipeline_mode = #tpu.pipeline_mode<synchronous>, transform_indices = @transform_2, window_bounds = array<i64: 8, 1>}, {pipeline_mode = #tpu.pipeline_mode<synchronous>, transform_indices = @transform_3, window_bounds = array<i64: 8, 1>}, {transform_indices = @transform_4, window_bounds = array<i64: 1, 8, 256>}]} {
    %c0 = arith.constant 0 : index
    %c0_0 = arith.constant 0 : index
    %c0_1 = arith.constant 0 : index
    %0 = vector.load %arg2[%c0, %c0_0, %c0_1] : memref<1x8x256xf32, #tpu.memory_space<vmem>>, vector<1x8x256xf32>
    %1 = vector.shape_cast %0 : vector<1x8x256xf32> to vector<8x256xf32>
    %c0_2 = arith.constant 0 : index
    %c0_3 = arith.constant 0 : index
    %2 = vector.load %arg3[%c0_2, %c0_3] : memref<8x8xf32, #tpu.memory_space<vmem>>, vector<8x8xf32>
    %cst = arith.constant dense<0.000000e+00> : vector<8x256xf32>
    %3 = tpu.matmul %2, %1, %cst {dimension_numbers = #tpu.dot_dimension_numbers<[1], [0], [0], [1], [0, 0, 1, 1], [], []>} : vector<8x8xf32>, vector<8x256xf32>, vector<8x256xf32> -> vector<8x256xf32>
    %cst_4 = arith.constant dense<0.000000e+00> : vector<256xf32>
    %4 = vector.multi_reduction <add>, %3, %cst_4 [0] : vector<8x256xf32> to vector<256xf32>
    %5 = vector.shape_cast %4 : vector<256xf32> to vector<1x256xf32>
    %cst_5 = arith.constant 1.250000e-01 : f32
    %6 = vector.broadcast %cst_5 : f32 to vector<1x256xf32>
    %7 = arith.mulf %5, %6 : vector<1x256xf32>
    %8 = vector.broadcast %7 : vector<1x256xf32> to vector<8x256xf32>
    %9 = arith.subf %3, %8 : vector<8x256xf32>
    %10 = arith.mulf %9, %9 : vector<8x256xf32>
    %cst_6 = arith.constant dense<0.000000e+00> : vector<256xf32>
    %11 = vector.multi_reduction <add>, %10, %cst_6 [0] : vector<8x256xf32> to vector<256xf32>
    %12 = vector.shape_cast %11 : vector<256xf32> to vector<1x256xf32>
    %cst_7 = arith.constant 1.250000e-01 : f32
    %13 = vector.broadcast %cst_7 : f32 to vector<1x256xf32>
    %14 = arith.mulf %12, %13 : vector<1x256xf32>
    %cst_8 = arith.constant 9.99999974E-6 : f32
    %15 = vector.broadcast %cst_8 : f32 to vector<1x256xf32>
    %16 = arith.addf %14, %15 : vector<1x256xf32>
    %17 = math.rsqrt %16 : vector<1x256xf32>
    %18 = vector.broadcast %17 : vector<1x256xf32> to vector<8x256xf32>
    %19 = arith.mulf %9, %18 : vector<8x256xf32>
    %c0_9 = arith.constant 0 : index
    %c0_10 = arith.constant 0 : index
    %20 = vector.load %arg4[%c0_9, %c0_10] : memref<8x1xf32, #tpu.memory_space<vmem>>, vector<8x1xf32>
    %21 = vector.broadcast %20 : vector<8x1xf32> to vector<8x256xf32>
    %22 = arith.mulf %19, %21 : vector<8x256xf32>
    %c0_11 = arith.constant 0 : index
    %c0_12 = arith.constant 0 : index
    %23 = vector.load %arg5[%c0_11, %c0_12] : memref<8x1xf32, #tpu.memory_space<vmem>>, vector<8x1xf32>
    %24 = vector.broadcast %23 : vector<8x1xf32> to vector<8x256xf32>
    %25 = arith.addf %22, %24 : vector<8x256xf32>
    %c0_13 = arith.constant 0 : index
    %c0_14 = arith.constant 0 : index
    %c0_15 = arith.constant 0 : index
    %26 = vector.load %arg6[%c0_13, %c0_14, %c0_15] : memref<1x8x256xf32, #tpu.memory_space<vmem>>, vector<1x8x256xf32>
    %27 = vector.shape_cast %26 : vector<1x8x256xf32> to vector<8x256xf32>
    %28 = vector.shape_cast %25 : vector<8x256xf32> to vector<1x8x256xf32>
    tpu.vector_store %arg6[%c0_13, %c0_14, %c0_15], %28 {strides = array<i32>} : memref<1x8x256xf32, #tpu.memory_space<vmem>>, vector<1x8x256xf32>,
    return
  }
  func.func @transform_0(%arg0: i32, %arg1: i32) -> (i32, i32, i32) {
    %c0_i32 = arith.constant 0 : i32
    %c0_i32_0 = arith.constant 0 : i32
    return %arg0, %c0_i32, %arg1 : i32, i32, i32
  }
  func.func @transform_1(%arg0: i32, %arg1: i32) -> (i32, i32) {
    %c0_i32 = arith.constant 0 : i32
    %c0_i32_0 = arith.constant 0 : i32
    %c0_i32_1 = arith.constant 0 : i32
    return %c0_i32, %c0_i32_0 : i32, i32
  }
  func.func @transform_2(%arg0: i32, %arg1: i32) -> (i32, i32) {
    %c0_i32 = arith.constant 0 : i32
    %c0_i32_0 = arith.constant 0 : i32
    %c0_i32_1 = arith.constant 0 : i32
    return %c0_i32, %c0_i32_0 : i32, i32
  }
  func.func @transform_3(%arg0: i32, %arg1: i32) -> (i32, i32) {
    %c0_i32 = arith.constant 0 : i32
    %c0_i32_0 = arith.constant 0 : i32
    %c0_i32_1 = arith.constant 0 : i32
    return %c0_i32, %c0_i32_0 : i32, i32
  }
  func.func @transform_4(%arg0: i32, %arg1: i32) -> (i32, i32, i32) {
    %c0_i32 = arith.constant 0 : i32
    %c0_i32_0 = arith.constant 0 : i32
    return %arg0, %c0_i32, %arg1 : i32, i32, i32
  }
}

</mosaic_0001>

<bundles_post_ra>
// kernel: tune_module.1
= control target key start
LH: loop header
LB: loop body
LE: loop exit
PB: predicated region body
PF: predicated region fallthrough
CT: control target
= control target key end

     0   :  { %9 = vsyncpa [#allocation3], 0  ;;  %s761_s0 = inlined_call_operand.vmem [shape: f32[2,8,256], index: 0, kind: input, shape index: {}]   ;;  %s762_s1 = inlined_call_operand.vmem [shape: f32[8,8], index: 1, kind: input, shape index: {}]   ;;  %s763_s2 = inlined_call_operand.vmem [shape: f32[8,1], index: 2, kind: input, shape index: {}]   ;;  %s764_s3 = inlined_call_operand.vmem [shape: f32[8,1], index: 3, kind: input, shape index: {}]   ;;  %s765_s4 = inlined_call_operand.hbm [shape: f32[2,8,256], index: 4, kind: output, shape index: {}]  }
   0x1   :  { %11 = vsyncpa [#allocation3 + $0x1], 0  ;;  %s640_s15 = smov 0   ;;  %s642_s16 = smov 0  }
   0x2   :  { %s644_s17 = smov 0   ;;  %s646_s18 = smov 0  }
   0x3   :  { %s648_s19 = smov 0   ;;  %s650_s20 = smov 0  }
   0x4 LB: > { %s454_s21 = sadd.s32 4294967295, %s610_s20   ;;  %s455_s22 = sadd.s32 4294967294, %s610_s20   ;;  %s610_s20 = sphi %s650_s20, %s17_s20   ;;  %s606_s19 = sphi %s648_s19, %s772_s19   ;;  %s602_s18 = sphi %s646_s18, %s771_s18   ;;  %s598_s17 = sphi %s644_s17, %s770_s17   ;;  %s594_s16 = sphi %s642_s16, %s769_s16   ;;  %s590_s15 = sphi %s640_s15, %s768_s15  }
   0x5   : > { %s29_s23 = sadd.s32 1, %s606_s19  ;;  %s129_s24 = sadd.s32 1, %s598_s17 }
   0x6   : > { %p31_p0 = scmp.ge.s32.totalorder %s29_s23, 2  ;;  %p139_p1 = scmp.ne.s32.totalorder %s598_s17, %s594_s16 }
   0x7   : > { %p140_p2 = scmp.eq.s32.totalorder %s454_s21, 1  ;;  %p145_p3 = scmp.ne.s32.totalorder %s594_s16, %s590_s15 }
   0x8   : > { %s774_s23 = smov (%p31_p0, %s29_s23), 0  ;;  %p146_p5 = scmp.eq.s32.totalorder %s455_s22, 1 }
   0x9   : > { %p680_p4 = por %p140_p2, %p139_p1  ;;  %s124_s26 = ssub.s32 %s606_s19, %s774_s23 }
   0xa   : > { %p458_p6 = scmp.ge.s32.totalorder %s610_s20, 1  ;;  %p127_p7 = scmp.eq.s32.totalorder %s124_s26, 0 }
   0xb   : > { %p687_p8 = por %p146_p5, %p145_p3  ;;  %p186_p9 = scmp.lt.s32.totalorder %s610_s20, 3 }
   0xc   : > { %s693_s28 = scalar_select %p127_p7, %s598_s17, %s129_s24  }
   0xd   : > { %p187_p10 = pnand %p458_p6, %p186_p9 }
   0xe   : > { %p217_p11 = scmp.lt.s32.totalorder (!%p187_p10), %s602_s18, 1  ;;  %v343_v0 = vld [vmem:[%s763_s2] sm:$0xff] (!%p187_p10)  ;;  %v612_v1 = vmov (!%p187_p10), 0.0   ;;  %v613_v2 = vmov (!%p187_p10), 0   ;;  %vm230_vm0 = vcmask (!%p187_p10), 64512   ;;  %s213_s14 = sand.u32 (!%p187_p10), 1, %s594_s16  }
   0xf   : > { %190 = sbr.rel (%p187_p10) target bundleno = 307 (0x133), region = 36  ;;  %298 = vmatprep.mubr.f32.mxu0 (!%p187_p10), %v612_v1  ;;  %527 = vset.pattern.permute.xlu0 (!%p187_p10), %v613_v2  ;;  %v351_v3 = vld [vmem:[%s764_s3] sm:$0xff] (!%p187_p10)  ;;  %s459_s21 = sshll.u32 (!%p187_p10), %s213_s14, 4 }
  0x10   : > { %346 = vperm.xlu0 (!%p187_p10), %527, %v343_v0   ;;  %v229_v6 = vld [vmem:[%s762_s1] sm:$0xff] (!%p187_p10)  ;;  %s469_s22 = sshll.u32 (!%p187_p10), %s602_s18, 8  ;;  %s215_s24 = scalar_lea.vmem (!%p187_p10), [#allocation2], %s459_s21 }
  0x11   : > { %s378_s26 = sshll.u32 (!%p187_p10), %s215_s24, 4  ;;  %s362_s6 = scalar_lea.sflag (!%p187_p10), [#allocation3], %s213_s14  ;;  %s716_s26 = int_to_ptr.vmem [resolvable:$true] %s378_s26 }
  0x12   : > { %s614_s7 = smov (!%p187_p10), [#allocation2]  }
  0x14   : > { %354 = vperm.xlu0 (!%p187_p10), %527, %v351_v3  }
  0x16   : > { %s218_s5 = scalar_select %p217_p11, %s602_s18, 1 }
  0x17   : > { %s532_s18 = scalar_lea.vmem %s716_s26, 256 }
  0x18   : > { %s468_s8 = sshll.u32 %s218_s5, 4  ;;  %s714_s5 = scalar_lea.hbm %s765_s4, %s469_s22 }
  0x19   : > { %s224_s11 = scalar_lea.vmem %s761_s0, %s468_s8  ;;  %p533_p12 = scmp.ne.s32.totalorder %s716_s26, %s532_s18 }
  0x1a   : > { %v228_v4 = vld [vmem:[%s224_s11 + $0x8] sm:$0xff]  ;;  %v227_v5 = vld [vmem:[%s224_s11] sm:$0xff]  ;;  %s536_s8 = sshll.u32 %s614_s7, 4  ;;  %s537_s8 = int_to_ptr.vmem [resolvable:$false] %s536_s8 }
  0x1b   : > { %234 = vmatprep.subr.mxu0 %v228_v4  ;;  %p534_p13 = pnand %p533_p12, %p680_p4  ;;  %s538_s9 = scalar_lea.vmem %s537_s8, 512 }
  0x1c   : > { %235 = vmatpush1.msra.mxu0 %v227_v5  ;;  %p539_p1 = scmp.lt.s32.totalorder %s716_s26, %s537_s8  ;;  %p540_p2 = scmp.lt.s32.totalorder %s538_s9, %s532_s18 }
  0x1d   : > { %462 = vmatmul.mubr.msk.f32.vlgmr.msra.gmra.mrb[0].mxu0 %vm230_vm0, %v229_v6  ;;  %p535_p0 = pneg %p534_p13 }
  0x1e   : > { %p541_p3 = por %p540_p2, %p539_p1 }
  0x20   : > { %p542_p5 = pnand %p541_p3, %p535_p0 }
  0x8f   : > { %v347_v43 = vpop.permute.xlu0 %346 }
  0x93   : > { %v355_v50 = vpop.permute.xlu0 %354 }
  0xf0   : > { %v300_v7 = vpop.f32.mrb[0].mxu0 }
  0xf1   : > { %v305_v8 = vrot.slane %v300_v7, 4  ;;  %v302_v9 = vpop.f32.mrb[1].mxu0 }
  0xf2   : > { %v311_v10 = vrot.slane %v302_v9, 4 }
  0xf3   : > { %v306_v11 = vadd.f32 %v305_v8, %v300_v7 }
  0xf4   : > { %v312_v12 = vadd.f32 %v311_v10, %v302_v9 }
  0xf5   : > { %v307_v13 = vrot.slane %v306_v11, 2 }
  0xf6   : > { %v313_v14 = vrot.slane %v312_v12, 2 }
  0xf7   : > { %v308_v15 = vadd.f32 %v307_v13, %v306_v11 }
  0xf8   : > { %v314_v16 = vadd.f32 %v313_v14, %v312_v12 }
  0xf9   : > { %v309_v17 = vrot.slane %v308_v15, 1 }
  0xfa   : > { %v315_v18 = vrot.slane %v314_v16, 1 }
  0xfb   : > { %v310_v19 = vadd.f32 %v309_v17, %v308_v15 }
  0xfc   : > { %v316_v20 = vadd.f32 %v315_v18, %v314_v16 }
  0xfd   : > { %v317_v21 = vmul.f32 0.125, %v310_v19 }
  0xfe   : > { %v318_v22 = vmul.f32 0.125, %v316_v20 }
  0xff   : > { %v319_v23 = vsub.f32 %v300_v7, %v317_v21 }
 0x100   : > { %v320_v24 = vsub.f32 %v302_v9, %v318_v22 }
 0x101   : > { %v321_v25 = vmul.f32 %v319_v23, %v319_v23 }
 0x102   : > { %v322_v26 = vmul.f32 %v320_v24, %v320_v24 }
 0x103   : > { %v323_v27 = vrot.slane %v321_v25, 4 }
 0x104   : > { %v329_v28 = vrot.slane %v322_v26, 4 }
 0x105   : > { %v324_v29 = vadd.f32 %v323_v27, %v321_v25 }
 0x106   : > { %v330_v30 = vadd.f32 %v329_v28, %v322_v26 }
 0x107   : > { %v325_v31 = vrot.slane %v324_v29, 2 }
 0x108   : > { %v331_v32 = vrot.slane %v330_v30, 2 }
 0x109   : > { %v326_v33 = vadd.f32 %v325_v31, %v324_v29 }
 0x10a   : > { %v332_v34 = vadd.f32 %v331_v32, %v330_v30 }
 0x10b   : > { %v327_v35 = vrot.slane %v326_v33, 1 }
 0x10c   : > { %v333_v36 = vrot.slane %v332_v34, 1 }
 0x10d   : > { %v328_v37 = vadd.f32 %v327_v35, %v326_v33 }
 0x10e   : > { %v334_v38 = vadd.f32 %v333_v36, %v332_v34 }
 0x10f   : > { %v335_v39 = vmul.f32 0.125, %v328_v37 }
 0x110   : > { %v336_v40 = vmul.f32 0.125, %v334_v38 }
 0x111   : > { %v337_v41 = vadd.f32 1e-05, %v335_v39 }
 0x112   : > { %v338_v42 = vadd.f32 1e-05, %v336_v40 }
 0x113   : > { %528 = vrsqrt.f32 %v337_v41 }
 0x114   : > { %530 = vrsqrt.f32 %v338_v42 }
 0x11d   : > { %v529_v44 = vpop.eup %528 }
 0x11e   : > { %v531_v45 = vpop.eup %530  ;;  %v341_v46 = vmul.f32 %v529_v44, %v319_v23 }
 0x11f   : > { %v342_v47 = vmul.f32 %v531_v45, %v320_v24 }
 0x120   : > { %v349_v48 = vmul.f32 %v347_v43, %v341_v46 }
 0x121   : > { %v350_v49 = vmul.f32 %v347_v43, %v342_v47 }
 0x122   : > { %v357_v51 = vadd.f32 %v355_v50, %v349_v48 }
 0x123   : > { %v358_v52 = vadd.f32 %v355_v50, %v350_v49 }
 0x124   : > { %359 = vst [vmem:[%s215_s24] sm:$0xff] %v357_v51 }
 0x125   : > { %360 = vst [vmem:[%s215_s24 + $0x8] sm:$0xff] %v358_v52 }
 0x126   : > { %545 = shalt.err (!%p542_p5)
}
 0x127   : > { %s546_s10 = scalar_lea.hbm %s714_s5, 256  ;;  %s550_s13 = scalar_lea.hbm %s765_s4, 512 }
 0x128   : > { %p547_p6 = scmp.ne.s32.totalorder %s714_s5, %s546_s10  ;;  %p551_p10 = scmp.lt.u32.totalorder %s714_s5, %s765_s4 }
 0x129   : > { %p552_p11 = scmp.lt.u32.totalorder %s550_s13, %s546_s10  ;;  %p554_p13 = scmp.lt.u32.totalorder %s546_s10, %s714_s5 }
 0x12a   : > { %p548_p7 = pnand %p547_p6, %p680_p4 }
 0x12b   : > { %p553_p12 = por %p552_p11, %p551_p10 }
 0x12c   : > { %p549_p9 = pneg %p548_p7 }
 0x12d   : > { %p555_p0 = por %p554_p13, %p553_p12 }
 0x12f   : > { %p556_p1 = pnand %p555_p0, %p549_p9 }
 0x131   : > { %559 = shalt.err (!%p556_p1)
}
 0x132   : > { %470 = dma.vmem_to_hbm [thread:$0]  (%p680_p4), %s716_s26, 256, %s714_s5, %s362_s6  }
 0x133 PF: > { %p476_p2 = scmp.ge.s32.totalorder %s610_s20, 2  ;;  %s390_s22 = sand.u32 1, %s590_s15  }
 0x134   : > { %s391_s24 = scalar_lea.sflag [#allocation3], %s390_s22 }
 0x135   : > { %p473_p3 = pnand %p476_p2, %p687_p8 }
 0x137   : > { %585 = dma.done.wait (!%p473_p3), %s391_s24, 256  }
 0x138   : > { %587 = vsyncadd (!%p473_p3), %s391_s24, 4294967040  ;;  %s17_s20 = sadd.s32 1, %s610_s20   ;;  %s768_s15 = smov %s594_s16 }
 0x139   : > { %p14_p5 = scmp.ge.s32.totalorder %s17_s20, 4   ;;  %s769_s16 = smov %s598_s17 }
 0x13a   : > { %s770_s17 = smov %s693_s28  ;;  %s771_s18 = smov %s606_s19 }
 0x13b   : > { %s772_s19 = smov %s774_s23  ;;  %16 = sbr.rel (!%p14_p5) target bundleno = 4 (0x4), region = 71 }
 0x142   :  { %396 = vsyncpa [#allocation3], 1 }
 0x143   :  { %398 = vsyncpa [#allocation3 + $0x1], 1 }

</bundles_post_ra>
